<compile_context>
chip_gen: v7x
topology: tpu7x:2x2x1
jax: 0.10.0
libtpu: 0.0.40
codegen_flags: <defaults>
</compile_context>

<pallas_src>
import inspect

import jax
import jax.numpy as jnp
from jax.experimental import pallas as pl
from jax.experimental.pallas import tpu as pltpu


# ----------------------------------------------------------------------------- kernel
def _make_mlp_kernel(matmul_dtype, bf16_intermediates):
    def kernel(x_ref, w0_ref, b0_ref, w1_ref, b1_ref, w2_ref, b2_ref, o_ref):
        # Layer 0: plain linear (no activation). Cast x on the VPU (cheap) so the MXU
        # sees matmul_dtype; accumulate, bias-add and tanh stay in f32.
        x = x_ref[...].astype(matmul_dtype)
        h = jnp.dot(x, w0_ref[...], preferred_element_type=jnp.float32) + b0_ref[...]
        # Layer 1: tanh(linear)
        lhs = h.astype(matmul_dtype) if bf16_intermediates else h
        h = jnp.dot(lhs, w1_ref[...], preferred_element_type=jnp.float32) + b1_ref[...]
        h = jnp.tanh(h)
        # Layer 2 (output): tanh(linear) — matches the PyTorch forward exactly.
        lhs = h.astype(matmul_dtype) if bf16_intermediates else h
        h = jnp.dot(lhs, w2_ref[...], preferred_element_type=jnp.float32) + b2_ref[...]
        h = jnp.tanh(h)
        o_ref[...] = h.astype(o_ref.dtype)

    return kernel


# ----------------------------------------------------------------------------- helpers
def _round_up(n, m):
    return ((n + m - 1) // m) * m


def _pad2(a, rows, cols, dtype):
    """Zero-pad a 2-D array to (rows, cols) and cast to dtype (single fused pass)."""
    out = jnp.zeros((rows, cols), dtype)
    return out.at[: a.shape[0], : a.shape[1]].set(a.astype(dtype))


def _supports_single_buffering():
    if not hasattr(pl, "Buffered"):
        return False
    try:
        return "pipeline_mode" in inspect.signature(pl.BlockSpec).parameters
    except (TypeError, ValueError):
        return True


_SINGLE_BUFFER_OK = _supports_single_buffering()


# ----------------------------------------------------------------------------- wrapper
def testnet_forward(x, params, *, tile_b=512, matmul_dtype=jnp.bfloat16,
                    bf16_intermediates=True):
    """Fused 3-layer MLP forward.

    x: (B, in_dim) float32.  params: [(W0,b0),(W1,b1),(W2,b2)] with W in
    (in_features, out_features) layout and b as (1, out_features).

    bf16_intermediates=True feeds layer-1/2 activations to the MXU in bf16
    (max throughput, documented precision tradeoff); False keeps them f32.
    """
    # TODO(synk): kernel is specialized to exactly 3 linear layers (the demo config);
    # arbitrary-depth TestNet would need a generated kernel or an in-kernel layer loop.
    (w0, b0), (w1, b1), (w2, b2) = params
    B, in_dim = x.shape
    h0, h1, out_dim = w0.shape[1], w1.shape[1], w2.shape[1]

    # Lane-dense padding: every feature dim up to a multiple of 128.
    in_p = _round_up(in_dim, 128)
    h0_p = _round_up(h0, 128)
    h1_p = _round_up(h1, 128)
    out_p = _round_up(out_dim, 128)

    # ---- batch tiling --------------------------------------------------------------
    b8 = _round_up(B, 8)
    if b8 <= 256:
        n_steps, tb = 1, b8                       # tiny batch: single resident step
    else:
        # >= 2 steps so the "parallel" batch axis can shard across v7x's 2 TCs, and a
        # near-even 8-row-aligned split keeps padding waste below n_steps*8 rows.
        n_steps = max(2, pl.cdiv(b8, tile_b))
        tb = _round_up(pl.cdiv(b8, n_steps), 8)
    b_pad = n_steps * tb

    # ---- operand prep ----------------------------------------------------------------
    # Weights: zero-pad to 128 multiples and cast to bf16 once (resident in VMEM).
    # Padding is exact: padded inputs/rows are zero, padded hidden units are 0 before
    # the first tanh and tanh(0)=0 afterwards; padded output columns are sliced off.
    w0p = _pad2(w0, in_p, h0_p, matmul_dtype)
    w1p = _pad2(w1, h0_p, h1_p, matmul_dtype)
    w2p = _pad2(w2, h1_p, out_p, matmul_dtype)
    b0p = _pad2(b0, 1, h0_p, jnp.float32)
    b1p = _pad2(b1, 1, h1_p, jnp.float32)
    b2p = _pad2(b2, 1, out_p, jnp.float32)

    # x: skip the extra pad/cast HBM pass when already aligned (cast happens in-kernel).
    if b_pad == B and in_p == in_dim:
        xp = x
    else:
        xp = _pad2(x, b_pad, in_p, matmul_dtype)

    grid = (n_steps,)

    def row_map(i):
        return (i, 0)

    def rep_map(i):
        return (0, 0)

    out_dtype = x.dtype  # keep f32 output; switch to bf16 if downstream tolerates it.

    weights = (w0p, b0p, w1p, b1p, w2p, b2p)
    weight_bytes = sum(int(a.size) * a.dtype.itemsize for a in weights)

    # Cost hint for XLA scheduling around the fused kernel.
    flops = 2 * b_pad * (in_p * h0_p + h0_p * h1_p + h1_p * out_p)
    transcendentals = b_pad * (h1_p + out_p)  # two tanh layers
    bytes_accessed = (int(xp.size) * xp.dtype.itemsize + weight_bytes
                      + b_pad * out_p * jnp.dtype(out_dtype).itemsize)
    cost = pl.CostEstimate(flops=flops, transcendentals=transcendentals,
                           bytes_accessed=bytes_accessed)

    def build_call(single_buffer_weights):
        if single_buffer_weights:
            def wspec(shape):
                return pl.BlockSpec(shape, rep_map, pipeline_mode=pl.Buffered(1))
        else:
            def wspec(shape):
                return pl.BlockSpec(shape, rep_map)

        # VMEM accounting: weights x1 (single-buffered) or x2; streamed x/out tiles are
        # double-buffered by default; add f32 intermediates + bf16 cast temporaries and
        # fixed headroom for Mosaic internal scratch. Cap at 56 MiB (< v7x's 64 MiB).
        wbuf = 1 if single_buffer_weights else 2
        stream = 2 * (tb * in_p * xp.dtype.itemsize
                      + tb * out_p * jnp.dtype(out_dtype).itemsize)
        interm = tb * (h0_p + h1_p + out_p) * 4 + tb * (in_p + h0_p + h1_p) * 2
        vmem_need = wbuf * weight_bytes + stream + interm + (2 << 20)
        vmem_limit = int(min(max(vmem_need, 4 << 20), 56 << 20))

        # TODO(synk): if profiling on v7x shows exposed x DMA at this tile, bump the x
        # in_spec to pipeline_mode=pl.Buffered(3).
        return pl.pallas_call(
            _make_mlp_kernel(matmul_dtype, bf16_intermediates),
            out_shape=jax.ShapeDtypeStruct((b_pad, out_p), out_dtype),
            grid=grid,
            in_specs=[
                pl.BlockSpec((tb, in_p), row_map),   # x tile (streamed, double-buffered)
                wspec((in_p, h0_p)),                 # W0 (resident)
                wspec((1, h0_p)),                    # b0 (f32)
                wspec((h0_p, h1_p)),                 # W1
                wspec((1, h1_p)),                    # b1
                wspec((h1_p, out_p)),                # W2
                wspec((1, out_p)),                   # b2
            ],
            out_specs=pl.BlockSpec((tb, out_p), row_map),
            compiler_params=pltpu.CompilerParams(
                dimension_semantics=("parallel",),
                vmem_limit_bytes=vmem_limit,
            ),
            cost_estimate=cost,
        )

    args = (xp, w0p, b0p, w1p, b1p, w2p, b2p)
    if _SINGLE_BUFFER_OK:
        try:
            out_padded = build_call(True)(*args)
        except Exception:  # fallback for Pallas versions rejecting Buffered(1)
            out_padded = build_call(False)(*args)
    else:
        out_padded = build_call(False)(*args)

    return out_padded[:B, :out_dim]


# ----------------------------------------------------------------------------- init / reference
def init_testnet_params(key, input_output, *args):
    """Deterministic init mirroring TestNet.__init__'s layer-shape chain.

    Returns [(W, b), ...] with W in (in_features, out_features) layout.
    """
    in_dim, out_dim = input_output
    dims = []
    for i in range(len(args)):
        if i == 0:
            dims.append((in_dim, args[0]))
        if i < len(args) - 1:
            dims.append((args[i], args[i + 1]))
        else:
            dims.append((args[i], out_dim))
    params = []
    for fan_in, fan_out in dims:
        key, kw, kb = jax.random.split(key, 3)
        bound = 1.0 / jnp.sqrt(fan_in)  # PyTorch nn.Linear default-style bound
        w = jax.random.uniform(kw, (fan_in, fan_out), jnp.float32, -bound, bound)
        b = jax.random.uniform(kb, (1, fan_out), jnp.float32, -bound, bound)
        params.append((w, b))
    return params


def testnet_reference(x, params):
    """Pure-JAX f32 reference of the PyTorch forward."""
    h = x
    for i, (w, b) in enumerate(params):
        h = h @ w + b
        if i > 0:
            h = jnp.tanh(h)
    return h


# ----------------------------------------------------------------------------- demo
if __name__ == "__main__":
    key = jax.random.PRNGKey(0)

    # Case 1: demo size — TestNet((16, 8), 32, 32): pad path, single grid step.
    batch, in_dim, out_dim = 8, 16, 8
    hidden = (32, 32)
    key, kx = jax.random.split(key)
    x = jax.random.normal(kx, (batch, in_dim), jnp.float32)
    params = init_testnet_params(key, (in_dim, out_dim), *hidden)

    out = jax.block_until_ready(testnet_forward(x, params))
    ref = testnet_reference(x, params)
    assert out.shape == (batch, out_dim)
    # bf16 matmul inputs/intermediates (f32 accumulation) -> loosened tolerance.
    assert jnp.allclose(out, ref, atol=5e-2, rtol=5e-2), "small-case mismatch"

    # Case 2: aligned shapes — exercises the unpadded-x passthrough + 2-step grid
    # (batch split across TensorCores on v7x) + output padding slice.
    batch2, in2, out2 = 512, 128, 64
    hidden2 = (256, 256)
    key, kx2 = jax.random.split(key)
    x2 = jax.random.normal(kx2, (batch2, in2), jnp.float32)
    params2 = init_testnet_params(key, (in2, out2), *hidden2)

    out2_v = jax.block_until_ready(testnet_forward(x2, params2))
    ref2 = testnet_reference(x2, params2)
    assert out2_v.shape == (batch2, out2)
    assert jnp.allclose(out2_v, ref2, atol=5e-2, rtol=5e-2), "large-case mismatch"

    print("KERNEL_OK")
</pallas_src>

<mosaic_0001>
module attributes {stable_mosaic.version = 11 : i64} {
  func.func @kernel(%arg0: i32, %arg1: memref<8x128xbf16, #tpu.memory_space<vmem>>, %arg2: memref<128x128xbf16, #tpu.memory_space<vmem>>, %arg3: memref<1x128xf32, #tpu.memory_space<vmem>>, %arg4: memref<128x128xbf16, #tpu.memory_space<vmem>>, %arg5: memref<1x128xf32, #tpu.memory_space<vmem>>, %arg6: memref<128x128xbf16, #tpu.memory_space<vmem>>, %arg7: memref<1x128xf32, #tpu.memory_space<vmem>>, %arg8: memref<8x128xf32, #tpu.memory_space<vmem>>) attributes {dimension_semantics = [#tpu.dimension_semantics<parallel>], iteration_bounds = array<i64: 1>, scalar_prefetch = 0 : i64, scratch_operands = 0 : i64, tpu.core_type = #tpu.core_type<tc>, window_params = [{transform_indices = @transform_0, window_bounds = array<i64: 8, 128>}, {pipeline_mode = #tpu.pipeline_mode<synchronous>, transform_indices = @transform_1, window_bounds = array<i64: 128, 128>}, {pipeline_mode = #tpu.pipeline_mode<synchronous>, transform_indices = @transform_2, window_bounds = array<i64: 1, 128>}, {pipeline_mode = #tpu.pipeline_mode<synchronous>, transform_indices = @transform_3, window_bounds = array<i64: 128, 128>}, {pipeline_mode = #tpu.pipeline_mode<synchronous>, transform_indices = @transform_4, window_bounds = array<i64: 1, 128>}, {pipeline_mode = #tpu.pipeline_mode<synchronous>, transform_indices = @transform_5, window_bounds = array<i64: 128, 128>}, {pipeline_mode = #tpu.pipeline_mode<synchronous>, transform_indices = @transform_6, window_bounds = array<i64: 1, 128>}, {transform_indices = @transform_7, window_bounds = array<i64: 8, 128>}]} {
    %c0 = arith.constant 0 : index
    %c0_0 = arith.constant 0 : index
    %0 = vector.load %arg1[%c0, %c0_0] : memref<8x128xbf16, #tpu.memory_space<vmem>>, vector<8x128xbf16>
    %c0_1 = arith.constant 0 : index
    %c0_2 = arith.constant 0 : index
    %1 = vector.load %arg2[%c0_1, %c0_2] : memref<128x128xbf16, #tpu.memory_space<vmem>>, vector<128x128xbf16>
    %cst = arith.constant dense<0.000000e+00> : vector<8x128xf32>
    %2 = tpu.matmul %0, %1, %cst {dimension_numbers = #tpu.dot_dimension_numbers<[1], [0], [0], [1], [0, 0, 1, 1], [], []>} : vector<8x128xbf16>, vector<128x128xbf16>, vector<8x128xf32> -> vector<8x128xf32>
    %c0_3 = arith.constant 0 : index
    %c0_4 = arith.constant 0 : index
    %3 = vector.load %arg3[%c0_3, %c0_4] : memref<1x128xf32, #tpu.memory_space<vmem>>, vector<1x128xf32>
    %4 = vector.broadcast %3 : vector<1x128xf32> to vector<8x128xf32>
    %5 = arith.addf %2, %4 : vector<8x128xf32>
    %6 = arith.truncf %5 : vector<8x128xf32> to vector<8x128xbf16>
    %c0_5 = arith.constant 0 : index
    %c0_6 = arith.constant 0 : index
    %7 = vector.load %arg4[%c0_5, %c0_6] : memref<128x128xbf16, #tpu.memory_space<vmem>>, vector<128x128xbf16>
    %cst_7 = arith.constant dense<0.000000e+00> : vector<8x128xf32>
    %8 = tpu.matmul %6, %7, %cst_7 {dimension_numbers = #tpu.dot_dimension_numbers<[1], [0], [0], [1], [0, 0, 1, 1], [], []>} : vector<8x128xbf16>, vector<128x128xbf16>, vector<8x128xf32> -> vector<8x128xf32>
    %c0_8 = arith.constant 0 : index
    %c0_9 = arith.constant 0 : index
    %9 = vector.load %arg5[%c0_8, %c0_9] : memref<1x128xf32, #tpu.memory_space<vmem>>, vector<1x128xf32>
    %10 = vector.broadcast %9 : vector<1x128xf32> to vector<8x128xf32>
    %11 = arith.addf %8, %10 : vector<8x128xf32>
    %12 = math.tanh %11 : vector<8x128xf32>
    %13 = arith.truncf %12 : vector<8x128xf32> to vector<8x128xbf16>
    %c0_10 = arith.constant 0 : index
    %c0_11 = arith.constant 0 : index
    %14 = vector.load %arg6[%c0_10, %c0_11] : memref<128x128xbf16, #tpu.memory_space<vmem>>, vector<128x128xbf16>
    %cst_12 = arith.constant dense<0.000000e+00> : vector<8x128xf32>
    %15 = tpu.matmul %13, %14, %cst_12 {dimension_numbers = #tpu.dot_dimension_numbers<[1], [0], [0], [1], [0, 0, 1, 1], [], []>} : vector<8x128xbf16>, vector<128x128xbf16>, vector<8x128xf32> -> vector<8x128xf32>
    %c0_13 = arith.constant 0 : index
    %c0_14 = arith.constant 0 : index
    %16 = vector.load %arg7[%c0_13, %c0_14] : memref<1x128xf32, #tpu.memory_space<vmem>>, vector<1x128xf32>
    %17 = vector.broadcast %16 : vector<1x128xf32> to vector<8x128xf32>
    %18 = arith.addf %15, %17 : vector<8x128xf32>
    %19 = math.tanh %18 : vector<8x128xf32>
    %c0_15 = arith.constant 0 : index
    %c0_16 = arith.constant 0 : index
    %20 = vector.load %arg8[%c0_15, %c0_16] : memref<8x128xf32, #tpu.memory_space<vmem>>, vector<8x128xf32>
    tpu.vector_store %arg8[%c0_15, %c0_16], %19 {strides = array<i32>} : memref<8x128xf32, #tpu.memory_space<vmem>>, vector<8x128xf32>,
    return
  }
  func.func @transform_0(%arg0: i32) -> (i32, i32) {
    %c0_i32 = arith.constant 0 : i32
    %c0_i32_0 = arith.constant 0 : i32
    return %arg0, %c0_i32 : i32, i32
  }
  func.func @transform_1(%arg0: i32) -> (i32, i32) {
    %c0_i32 = arith.constant 0 : i32
    %c0_i32_0 = arith.constant 0 : i32
    %c0_i32_1 = arith.constant 0 : i32
    return %c0_i32, %c0_i32_0 : i32, i32
  }
  func.func @transform_2(%arg0: i32) -> (i32, i32) {
    %c0_i32 = arith.constant 0 : i32
    %c0_i32_0 = arith.constant 0 : i32
    %c0_i32_1 = arith.constant 0 : i32
    return %c0_i32, %c0_i32_0 : i32, i32
  }
  func.func @transform_3(%arg0: i32) -> (i32, i32) {
    %c0_i32 = arith.constant 0 : i32
    %c0_i32_0 = arith.constant 0 : i32
    %c0_i32_1 = arith.constant 0 : i32
    return %c0_i32, %c0_i32_0 : i32, i32
  }
  func.func @transform_4(%arg0: i32) -> (i32, i32) {
    %c0_i32 = arith.constant 0 : i32
    %c0_i32_0 = arith.constant 0 : i32
    %c0_i32_1 = arith.constant 0 : i32
    return %c0_i32, %c0_i32_0 : i32, i32
  }
  func.func @transform_5(%arg0: i32) -> (i32, i32) {
    %c0_i32 = arith.constant 0 : i32
    %c0_i32_0 = arith.constant 0 : i32
    %c0_i32_1 = arith.constant 0 : i32
    return %c0_i32, %c0_i32_0 : i32, i32
  }
  func.func @transform_6(%arg0: i32) -> (i32, i32) {
    %c0_i32 = arith.constant 0 : i32
    %c0_i32_0 = arith.constant 0 : i32
    %c0_i32_1 = arith.constant 0 : i32
    return %c0_i32, %c0_i32_0 : i32, i32
  }
  func.func @transform_7(%arg0: i32) -> (i32, i32) {
    %c0_i32 = arith.constant 0 : i32
    %c0_i32_0 = arith.constant 0 : i32
    return %arg0, %c0_i32 : i32, i32
  }
}

module attributes {stable_mosaic.version = 11 : i64} {
  func.func @kernel(%arg0: i32, %arg1: memref<8x128xbf16, #tpu.memory_space<vmem>>, %arg2: memref<128x128xbf16, #tpu.memory_space<vmem>>, %arg3: memref<1x128xf32, #tpu.memory_space<vmem>>, %arg4: memref<128x128xbf16, #tpu.memory_space<vmem>>, %arg5: memref<1x128xf32, #tpu.memory_space<vmem>>, %arg6: memref<128x128xbf16, #tpu.memory_space<vmem>>, %arg7: memref<1x128xf32, #tpu.memory_space<vmem>>, %arg8: memref<8x128xf32, #tpu.memory_space<vmem>>) attributes {dimension_semantics = [#tpu.dimension_semantics<parallel>], iteration_bounds = array<i64: 1>, scalar_prefetch = 0 : i64, scratch_operands = 0 : i64, tpu.core_type = #tpu.core_type<tc>, window_params = [{transform_indices = @transform_0, window_bounds = array<i64: 8, 128>}, {pipeline_mode = #tpu.pipeline_mode<synchronous>, transform_indices = @transform_1, window_bounds = array<i64: 128, 128>}, {pipeline_mode = #tpu.pipeline_mode<synchronous>, transform_indices = @transform_2, window_bounds = array<i64: 1, 128>}, {pipeline_mode = #tpu.pipeline_mode<synchronous>, transform_indices = @transform_3, window_bounds = array<i64: 128, 128>}, {pipeline_mode = #tpu.pipeline_mode<synchronous>, transform_indices = @transform_4, window_bounds = array<i64: 1, 128>}, {pipeline_mode = #tpu.pipeline_mode<synchronous>, transform_indices = @transform_5, window_bounds = array<i64: 128, 128>}, {pipeline_mode = #tpu.pipeline_mode<synchronous>, transform_indices = @transform_6, window_bounds = array<i64: 1, 128>}, {transform_indices = @transform_7, window_bounds = array<i64: 8, 128>}]} {
    %c0 = arith.constant 0 : index
    %c0_0 = arith.constant 0 : index
    %0 = vector.load %arg1[%c0, %c0_0] : memref<8x128xbf16, #tpu.memory_space<vmem>>, vector<8x128xbf16>
    %c0_1 = arith.constant 0 : index
    %c0_2 = arith.constant 0 : index
    %1 = vector.load %arg2[%c0_1, %c0_2] : memref<128x128xbf16, #tpu.memory_space<vmem>>, vector<128x128xbf16>
    %cst = arith.constant dense<0.000000e+00> : vector<8x128xf32>
    %2 = tpu.matmul %0, %1, %cst {dimension_numbers = #tpu.dot_dimension_numbers<[1], [0], [0], [1], [0, 0, 1, 1], [], []>} : vector<8x128xbf16>, vector<128x128xbf16>, vector<8x128xf32> -> vector<8x128xf32>
    %c0_3 = arith.constant 0 : index
    %c0_4 = arith.constant 0 : index
    %3 = vector.load %arg3[%c0_3, %c0_4] : memref<1x128xf32, #tpu.memory_space<vmem>>, vector<1x128xf32>
    %4 = vector.broadcast %3 : vector<1x128xf32> to vector<8x128xf32>
    %5 = arith.addf %2, %4 : vector<8x128xf32>
    %6 = arith.truncf %5 : vector<8x128xf32> to vector<8x128xbf16>
    %c0_5 = arith.constant 0 : index
    %c0_6 = arith.constant 0 : index
    %7 = vector.load %arg4[%c0_5, %c0_6] : memref<128x128xbf16, #tpu.memory_space<vmem>>, vector<128x128xbf16>
    %cst_7 = arith.constant dense<0.000000e+00> : vector<8x128xf32>
    %8 = tpu.matmul %6, %7, %cst_7 {dimension_numbers = #tpu.dot_dimension_numbers<[1], [0], [0], [1], [0, 0, 1, 1], [], []>} : vector<8x128xbf16>, vector<128x128xbf16>, vector<8x128xf32> -> vector<8x128xf32>
    %c0_8 = arith.constant 0 : index
    %c0_9 = arith.constant 0 : index
    %9 = vector.load %arg5[%c0_8, %c0_9] : memref<1x128xf32, #tpu.memory_space<vmem>>, vector<1x128xf32>
    %10 = vector.broadcast %9 : vector<1x128xf32> to vector<8x128xf32>
    %11 = arith.addf %8, %10 : vector<8x128xf32>
    %12 = math.tanh %11 : vector<8x128xf32>
    %13 = arith.truncf %12 : vector<8x128xf32> to vector<8x128xbf16>
    %c0_10 = arith.constant 0 : index
    %c0_11 = arith.constant 0 : index
    %14 = vector.load %arg6[%c0_10, %c0_11] : memref<128x128xbf16, #tpu.memory_space<vmem>>, vector<128x128xbf16>
    %cst_12 = arith.constant dense<0.000000e+00> : vector<8x128xf32>
    %15 = tpu.matmul %13, %14, %cst_12 {dimension_numbers = #tpu.dot_dimension_numbers<[1], [0], [0], [1], [0, 0, 1, 1], [], []>} : vector<8x128xbf16>, vector<128x128xbf16>, vector<8x128xf32> -> vector<8x128xf32>
    %c0_13 = arith.constant 0 : index
    %c0_14 = arith.constant 0 : index
    %16 = vector.load %arg7[%c0_13, %c0_14] : memref<1x128xf32, #tpu.memory_space<vmem>>, vector<1x128xf32>
    %17 = vector.broadcast %16 : vector<1x128xf32> to vector<8x128xf32>
    %18 = arith.addf %15, %17 : vector<8x128xf32>
    %19 = math.tanh %18 : vector<8x128xf32>
    %c0_15 = arith.constant 0 : index
    %c0_16 = arith.constant 0 : index
    %20 = vector.load %arg8[%c0_15, %c0_16] : memref<8x128xf32, #tpu.memory_space<vmem>>, vector<8x128xf32>
    tpu.vector_store %arg8[%c0_15, %c0_16], %19 {strides = array<i32>} : memref<8x128xf32, #tpu.memory_space<vmem>>, vector<8x128xf32>,
    return
  }
  func.func @transform_0(%arg0: i32) -> (i32, i32) {
    %c0_i32 = arith.constant 0 : i32
    %c0_i32_0 = arith.constant 0 : i32
    return %arg0, %c0_i32 : i32, i32
  }
  func.func @transform_1(%arg0: i32) -> (i32, i32) {
    %c0_i32 = arith.constant 0 : i32
    %c0_i32_0 = arith.constant 0 : i32
    %c0_i32_1 = arith.constant 0 : i32
    return %c0_i32, %c0_i32_0 : i32, i32
  }
  func.func @transform_2(%arg0: i32) -> (i32, i32) {
    %c0_i32 = arith.constant 0 : i32
    %c0_i32_0 = arith.constant 0 : i32
    %c0_i32_1 = arith.constant 0 : i32
    return %c0_i32, %c0_i32_0 : i32, i32
  }
  func.func @transform_3(%arg0: i32) -> (i32, i32) {
    %c0_i32 = arith.constant 0 : i32
    %c0_i32_0 = arith.constant 0 : i32
    %c0_i32_1 = arith.constant 0 : i32
    return %c0_i32, %c0_i32_0 : i32, i32
  }
  func.func @transform_4(%arg0: i32) -> (i32, i32) {
    %c0_i32 = arith.constant 0 : i32
    %c0_i32_0 = arith.constant 0 : i32
    %c0_i32_1 = arith.constant 0 : i32
    return %c0_i32, %c0_i32_0 : i32, i32
  }
  func.func @transform_5(%arg0: i32) -> (i32, i32) {
    %c0_i32 = arith.constant 0 : i32
    %c0_i32_0 = arith.constant 0 : i32
    %c0_i32_1 = arith.constant 0 : i32
    return %c0_i32, %c0_i32_0 : i32, i32
  }
  func.func @transform_6(%arg0: i32) -> (i32, i32) {
    %c0_i32 = arith.constant 0 : i32
    %c0_i32_0 = arith.constant 0 : i32
    %c0_i32_1 = arith.constant 0 : i32
    return %c0_i32, %c0_i32_0 : i32, i32
  }
  func.func @transform_7(%arg0: i32) -> (i32, i32) {
    %c0_i32 = arith.constant 0 : i32
    %c0_i32_0 = arith.constant 0 : i32
    return %arg0, %c0_i32 : i32, i32
  }
}

</mosaic_0001>

<bundles_post_ra>
// kernel: tpu_custom_call.1
= control target key start
LH: loop header
LB: loop body
LE: loop exit
PB: predicated region body
PF: predicated region fallthrough
CT: control target
= control target key end

     0   :  { %12 = vsyncpa [#allocation3], 0  ;;  %s863_s0 = inlined_call_operand.hbm [shape: bf16[8,128], index: 0, kind: input, shape index: {}]   ;;  %s864_s1 = inlined_call_operand.hbm [shape: bf16[128,128], index: 1, kind: input, shape index: {}]   ;;  %s865_s2 = inlined_call_operand.vmem [shape: f32[1,128], index: 2, kind: input, shape index: {}]   ;;  %s866_s3 = inlined_call_operand.hbm [shape: bf16[128,128], index: 3, kind: input, shape index: {}]   ;;  %s867_s4 = inlined_call_operand.vmem [shape: f32[1,128], index: 4, kind: input, shape index: {}]   ;;  %s868_s5 = inlined_call_operand.hbm [shape: bf16[128,128], index: 5, kind: input, shape index: {}]   ;;  %s869_s6 = inlined_call_operand.vmem [shape: f32[1,128], index: 6, kind: input, shape index: {}]   ;;  %s870_s7 = inlined_call_operand.hbm [shape: f32[8,128], index: 7, kind: output, shape index: {}]  }
   0x1   :  { %13 = vsyncpa [#allocation6], 0 }
   0x2   :  { %14 = vsyncpa [#allocation9], 0 }
   0x3   :  { %15 = vsyncpa [#allocation4], 0  ;;  %s706_s24 = smov [#allocation5]   ;;  %s588_s28 = scalar_lea.hbm %s864_s1, 1024 }
   0x4   :  { %s31_s25 = sshll.u32 %s706_s24, 4  ;;  %p589_p0 = scmp.ne.s32.totalorder %s864_s1, %s588_s28  ;;  %s32_s25 = int_to_ptr.vmem [resolvable:$true] %s31_s25 }
   0x5   :  { %p592_p1 = scmp.lt.u32.totalorder %s588_s28, %s864_s1 }
   0x7   :  { %p594_p2 = pnand %p592_p1, %p589_p0 }
   0x9   :  { %597 = shalt.err (!%p594_p2)
}
   0xa   :  { %s598_s10 = scalar_lea.vmem %s32_s25, 1024  ;;  %p603_p4 = scmp.lt.s32.totalorder %s32_s25, %s32_s25 }
   0xb   :  { %p599_p3 = scmp.ne.s32.totalorder %s32_s25, %s598_s10  ;;  %p604_p5 = scmp.lt.s32.totalorder %s598_s10, %s598_s10 }
   0xd   :  { %p605_p6 = por %p604_p5, %p603_p4 }
   0xf   :  { %p606_p7 = pnand %p605_p6, %p599_p3 }
  0x11   :  { %609 = shalt.err (!%p606_p7)
}
  0x12   :  { %s707_s11 = smov 64   ;;  %s708_s12 = smov 4  }
  0x13   :  { %37 = dma.hbm_to_vmem [thread:$0]  %s864_s1, 1024, %s32_s25, [#allocation6], %s707_s11, %s707_s11, %s708_s12  }
  0x14   :  { %s709_s15 = smov [#allocation2]   ;;  %s710_s17 = smov [#allocation7]  }
  0x15   :  { %s22_s16 = sshll.u32 %s709_s15, 4  ;;  %s45_s18 = sshll.u32 %s710_s17, 4  ;;  %s23_s16 = int_to_ptr.vmem [resolvable:$true] %s22_s16  ;;  %s46_s18 = int_to_ptr.vmem [resolvable:$true] %s45_s18 }
  0x16   :  { %s610_s21 = scalar_lea.hbm %s863_s0, 64 }
  0x17   :  { %p611_p8 = scmp.ne.s32.totalorder %s863_s0, %s610_s21  ;;  %p614_p9 = scmp.lt.u32.totalorder %s610_s21, %s863_s0 }
  0x19   :  { %p616_p10 = pnand %p614_p9, %p611_p8 }
  0x1b   :  { %619 = shalt.err (!%p616_p10)
}
  0x1c   :  { %s620_s1 = scalar_lea.vmem %s23_s16, 64  ;;  %p625_p12 = scmp.lt.s32.totalorder %s23_s16, %s23_s16 }
  0x1d   :  { %p621_p11 = scmp.ne.s32.totalorder %s23_s16, %s620_s1  ;;  %p626_p13 = scmp.lt.s32.totalorder %s620_s1, %s620_s1 }
  0x1f   :  { %p627_p0 = por %p626_p13, %p625_p12 }
  0x21   :  { %p628_p1 = pnand %p627_p0, %p621_p11 }
  0x23   :  { %631 = shalt.err (!%p628_p1)
}
  0x24   :  { %25 = dma.hbm_to_vmem [thread:$0]  %s863_s0, 64, %s23_s16, [#allocation3]  }
  0x25   :  { %s632_s30 = scalar_lea.hbm %s866_s3, 1024 }
  0x26   :  { %p633_p2 = scmp.ne.s32.totalorder %s866_s3, %s632_s30  ;;  %p636_p3 = scmp.lt.u32.totalorder %s632_s30, %s866_s3 }
  0x28   :  { %p638_p4 = pnand %p636_p3, %p633_p2 }
  0x2a   :  { %641 = shalt.err (!%p638_p4)
}
  0x2b   :  { %s642_s14 = scalar_lea.vmem %s46_s18, 1024  ;;  %p647_p6 = scmp.lt.s32.totalorder %s46_s18, %s46_s18 }
  0x2c   :  { %p643_p5 = scmp.ne.s32.totalorder %s46_s18, %s642_s14  ;;  %p648_p7 = scmp.lt.s32.totalorder %s642_s14, %s642_s14 }
  0x2e   :  { %p649_p8 = por %p648_p7, %p647_p6 }
  0x30   :  { %p650_p9 = pnand %p649_p8, %p643_p5 }
  0x32   :  { %653 = shalt.err (!%p650_p9)
}
  0x33   :  { %51 = dma.hbm_to_vmem [thread:$0]  %s866_s3, 1024, %s46_s18, [#allocation6], %s707_s11, %s707_s11, %s708_s12  }
  0x34   :  { %s711_s16 = smov [#allocation8]   ;;  %s654_s21 = scalar_lea.hbm %s868_s5, 1024 }
  0x35   :  { %s59_s17 = sshll.u32 %s711_s16, 4  ;;  %p655_p10 = scmp.ne.s32.totalorder %s868_s5, %s654_s21  ;;  %s60_s17 = int_to_ptr.vmem [resolvable:$true] %s59_s17 }
  0x36   :  { %p658_p11 = scmp.lt.u32.totalorder %s654_s21, %s868_s5 }
  0x38   :  { %p660_p12 = pnand %p658_p11, %p655_p10 }
  0x3a   :  { %663 = shalt.err (!%p660_p12)
}
  0x3b   :  { %s664_s1 = scalar_lea.vmem %s60_s17, 1024  ;;  %p669_p0 = scmp.lt.s32.totalorder %s60_s17, %s60_s17 }
  0x3c   :  { %p665_p13 = scmp.ne.s32.totalorder %s60_s17, %s664_s1  ;;  %p670_p1 = scmp.lt.s32.totalorder %s664_s1, %s664_s1 }
  0x3e   :  { %p671_p2 = por %p670_p1, %p669_p0 }
  0x40   :  { %p672_p3 = pnand %p671_p2, %p665_p13 }
  0x42   :  { %675 = shalt.err (!%p672_p3)
}
  0x43   :  { %65 = dma.hbm_to_vmem [thread:$0]  %s868_s5, 1024, %s60_s17, [#allocation9], %s707_s11, %s707_s11, %s708_s12  }
  0x44   :  { %698 = dma.done.wait [#allocation3], 64  }
  0x45   :  { %699 = vsyncadd [#allocation3], 4294967232 }
  0x46   :  { %700 = dma.done.wait [#allocation6], 2048  }
  0x47   :  { %701 = vsyncadd [#allocation6], 4294965248 }
  0x48   :  { %702 = dma.done.wait [#allocation9], 1024  }
  0x49   :  { %703 = vsyncadd [#allocation9], 4294966272  ;;  %v712_v0 = vmov 0.0   ;;  %vm713_vm0 = vmmov 0   ;;  %v560_v1 = vld [vmem:[#allocation5] sm:$0xff]   ;;  %v561_v2 = vld [vmem:[#allocation5 + $0x8] sm:$0xff]  }
  0x4a   :  { %491 = vmatprep.subr.bf16.mxu0 %v712_v0  ;;  %507 = vmatprep.mubr.msk.bf16.mxu0 %vm713_vm0, %v712_v0  ;;  %v562_v3 = vld [vmem:[#allocation5 + $0x10] sm:$0xff]   ;;  %v568_v4 = vld [vmem:[#allocation7] sm:$0xff]   ;;  %v563_v5 = vld [vmem:[#allocation5 + $0x18] sm:$0xff]  }
  0x4b   :  { %511 = vmatprep.subr.bf16.mxu1 %v712_v0  ;;  %527 = vmatprep.mubr.msk.bf16.mxu1 %vm713_vm0, %v712_v0  ;;  %v569_v6 = vld [vmem:[#allocation7 + $0x8] sm:$0xff]   ;;  %v564_v7 = vld [vmem:[#allocation5 + $0x20] sm:$0xff]   ;;  %v570_v8 = vld [vmem:[#allocation7 + $0x10] sm:$0xff]  }
  0x4c   :  { %492 = vmatpush3.bf16.msra.mxu0 %v560_v1  ;;  %512 = vmatpush3.bf16.msra.mxu1 %v568_v4  ;;  %v565_v9 = vld [vmem:[#allocation5 + $0x28] sm:$0xff]   ;;  %v571_v10 = vld [vmem:[#allocation7 + $0x18] sm:$0xff]   ;;  %v566_v11 = vld [vmem:[#allocation5 + $0x30] sm:$0xff]  }
  0x4d   :  { %493 = vmatprep.subr.bf16.mxu0 %v712_v0  ;;  %513 = vmatprep.subr.bf16.mxu1 %v712_v0  ;;  %v572_v12 = vld [vmem:[#allocation7 + $0x20] sm:$0xff]   ;;  %v567_v13 = vld [vmem:[#allocation5 + $0x38] sm:$0xff]   ;;  %v573_v14 = vld [vmem:[#allocation7 + $0x28] sm:$0xff]  }
  0x4e   :  { %v81_v15 = vld [vmem:[#allocation2] sm:$0xf]  ;;  %v574_v16 = vld [vmem:[#allocation7 + $0x30] sm:$0xff]   ;;  %v576_v18 = vld [vmem:[#allocation8] sm:$0xff]  }
  0x4f   :  { %v575_v17 = vld [vmem:[#allocation7 + $0x38] sm:$0xff]   ;;  %v577_v19 = vld [vmem:[#allocation8 + $0x8] sm:$0xff]   ;;  %v578_v20 = vld [vmem:[#allocation8 + $0x10] sm:$0xff]  }
  0x50   :  { %494 = vmatpush3.bf16.msra.mxu0 %v561_v2  ;;  %514 = vmatpush3.bf16.msra.mxu1 %v569_v6  ;;  %v579_v21 = vld [vmem:[#allocation8 + $0x18] sm:$0xff]   ;;  %v580_v29 = vld [vmem:[#allocation8 + $0x20] sm:$0xff]   ;;  %v581_v30 = vld [vmem:[#allocation8 + $0x28] sm:$0xff]  }
  0x51   :  { %495 = vmatprep.subr.bf16.mxu0 %v712_v0  ;;  %515 = vmatprep.subr.bf16.mxu1 %v712_v0  ;;  %v437_v22 = vld [vmem:[%s865_s2] ss:$0 sm:$0xff]  ;;  %v582_v31 = vld [vmem:[#allocation8 + $0x30] sm:$0xff]  }
  0x52   :  { %v583_v32 = vld [vmem:[#allocation8 + $0x38] sm:$0xff]  }
  0x53   :  { %v446_v33 = vld [vmem:[%s867_s4] ss:$0 sm:$0xff]  ;;  %s714_s4 = smov [#allocation10]  }
  0x54   :  { %496 = vmatpush3.bf16.msra.mxu0 %v562_v3  ;;  %516 = vmatpush3.bf16.msra.mxu1 %v570_v8  ;;  %v455_v41 = vld [vmem:[%s869_s6] ss:$0 sm:$0xff]  ;;  %s426_s28 = sshll.u32 %s714_s4, 4  ;;  %s427_s28 = int_to_ptr.vmem [resolvable:$true] %s426_s28 }
  0x55   :  { %497 = vmatprep.subr.bf16.mxu0 %v712_v0  ;;  %517 = vmatprep.subr.bf16.mxu1 %v712_v0  ;;  %s676_s29 = scalar_lea.vmem %s427_s28, 128  ;;  %p681_p5 = scmp.lt.s32.totalorder %s427_s28, %s427_s28 }
  0x56   :  { %p677_p4 = scmp.ne.s32.totalorder %s427_s28, %s676_s29  ;;  %p682_p6 = scmp.lt.s32.totalorder %s676_s29, %s676_s29 }
  0x58   :  { %498 = vmatpush3.bf16.msra.mxu0 %v563_v5  ;;  %518 = vmatpush3.bf16.msra.mxu1 %v571_v10  ;;  %p683_p7 = por %p682_p6, %p681_p5 }
  0x59   :  { %499 = vmatprep.subr.bf16.mxu0 %v712_v0  ;;  %519 = vmatprep.subr.bf16.mxu1 %v712_v0 }
  0x5a   :  { %p684_p8 = pnand %p683_p7, %p677_p4 }
  0x5c   :  { %500 = vmatpush3.bf16.msra.mxu0 %v564_v7  ;;  %520 = vmatpush3.bf16.msra.mxu1 %v572_v12 }
  0x5d   :  { %501 = vmatprep.subr.bf16.mxu0 %v712_v0  ;;  %521 = vmatprep.subr.bf16.mxu1 %v712_v0 }
  0x60   :  { %502 = vmatpush3.bf16.msra.mxu0 %v565_v9  ;;  %522 = vmatpush3.bf16.msra.mxu1 %v573_v14 }
  0x61   :  { %503 = vmatprep.subr.bf16.mxu0 %v712_v0  ;;  %523 = vmatprep.subr.bf16.mxu1 %v712_v0 }
  0x64   :  { %504 = vmatpush3.bf16.msra.mxu0 %v566_v11  ;;  %524 = vmatpush3.bf16.msra.mxu1 %v574_v16 }
  0x65   :  { %505 = vmatprep.subr.bf16.mxu0 %v712_v0  ;;  %525 = vmatprep.subr.bf16.mxu1 %v712_v0 }
  0x68   :  { %506 = vmatpush3.bf16.msra.mxu0 %v567_v13  ;;  %526 = vmatpush3.bf16.msra.mxu1 %v575_v17 }
  0x69   :  { %531 = vmatprep.subr.bf16.mxu0 %v712_v0 }
  0x6b   :  { %508 = vmatmul.mubr.bf16.vlgmr.msra.gmra.mrb[0].mxu0 %v81_v15 }
  0x6c   :  { %547 = vmatprep.mubr.msk.bf16.mxu0 %vm713_vm0, %v712_v0  ;;  %532 = vmatpush3.bf16.msra.mxu0 %v576_v18 }
  0x6d   :  { %533 = vmatprep.subr.bf16.mxu0 %v712_v0 }
  0x70   :  { %534 = vmatpush3.bf16.msra.mxu0 %v577_v19 }
  0x71   :  { %535 = vmatprep.subr.bf16.mxu0 %v712_v0 }
  0x74   :  { %536 = vmatpush3.bf16.msra.mxu0 %v578_v20 }
  0x75   :  { %537 = vmatprep.subr.bf16.mxu0 %v712_v0 }
  0x78   :  { %538 = vmatpush3.bf16.msra.mxu0 %v579_v21 }
  0x79   :  { %539 = vmatprep.subr.bf16.mxu0 %v712_v0 }
  0x7c   :  { %540 = vmatpush3.bf16.msra.mxu0 %v580_v29 }
  0x7d   :  { %541 = vmatprep.subr.bf16.mxu0 %v712_v0 }
  0x80   :  { %542 = vmatpush3.bf16.msra.mxu0 %v581_v30 }
  0x81   :  { %543 = vmatprep.subr.bf16.mxu0 %v712_v0 }
  0x84   :  { %544 = vmatpush3.bf16.msra.mxu0 %v582_v31 }
  0x85   :  { %545 = vmatprep.subr.bf16.mxu0 %v712_v0 }
  0x88   :  { %546 = vmatpush3.bf16.msra.mxu0 %v583_v32 }
 0x13e   :  { %v187_v23 = vpop.f32.mrb[0].mxu0 }
 0x13f   :  { %v188_v24 = vadd.f32 %v437_v22, %v187_v23  ;;  %v509_v25 = vpop.f32.mrb[1].mxu0 }
 0x140   :  { %v190_v26 = vpop.f32.mrb[2].mxu0 }
 0x141   :  { %v193_v27 = vpack.c.bf16 %v188_v24, %v188_v24  ;;  %v510_v28 = vpop.f32.mrb[3].mxu0 }
 0x143   :  { %528 = vmatmul.mubr.bf16.vlgmr.msra.gmra.mrb[0].mxu1 %v193_v27 }
 0x216   :  { %v299_v34 = vpop.f32.mrb[0].mxu1 }
 0x217   :  { %v300_v35 = vadd.f32 %v446_v33, %v299_v34  ;;  %v529_v36 = vpop.f32.mrb[1].mxu1 }
 0x218   :  { %v302_v37 = vpop.f32.mrb[2].mxu1 }
 0x219   :  { %584 = vtanh.f32 %v300_v35  ;;  %v530_v38 = vpop.f32.mrb[3].mxu1 }
 0x223   :  { %v585_v39 = vpop.eup %584 }
 0x224   :  { %v306_v40 = vpack.c.bf16 %v585_v39, %v585_v39 }
 0x226   :  { %548 = vmatmul.mubr.bf16.vlgmr.msra.gmra.mrb[4].mxu0 %v306_v40 }
 0x2f9   :  { %v412_v42 = vpop.f32.mrb[4].mxu0 }
 0x2fa   :  { %v413_v43 = vadd.f32 %v455_v41, %v412_v42  ;;  %v549_v44 = vpop.f32.mrb[5].mxu0 }
 0x2fb   :  { %v415_v45 = vpop.f32.mrb[6].mxu0 }
 0x2fc   :  { %586 = vtanh.f32 %v413_v43  ;;  %v550_v46 = vpop.f32.mrb[7].mxu0 }
 0x306   :  { %v587_v47 = vpop.eup %586 }
 0x307   :  { %419 = vst [vmem:[#allocation10] sm:$0xff] %v587_v47 }
 0x308   :  { %687 = shalt.err (!%p684_p8)
}
 0x309   :  { %s688_s8 = scalar_lea.hbm %s870_s7, 128 }
 0x30a   :  { %p689_p9 = scmp.ne.s32.totalorder %s870_s7, %s688_s8  ;;  %p692_p10 = scmp.lt.u32.totalorder %s688_s8, %s870_s7 }
 0x30c   :  { %p694_p11 = pnand %p692_p10, %p689_p9 }
 0x30e   :  { %697 = shalt.err (!%p694_p11)
}
 0x30f   :  { %429 = dma.vmem_to_hbm [thread:$0]  %s427_s28, 128, %s870_s7, [#allocation4]  }
 0x310   :  { %704 = dma.done.wait [#allocation4], 128  }
 0x311   :  { %705 = vsyncadd [#allocation4], 4294967168 }
 0x312   :  { %433 = vsyncpa [#allocation3], 1 }
 0x313   :  { %434 = vsyncpa [#allocation6], 1 }
 0x314   :  { %435 = vsyncpa [#allocation9], 1 }
 0x315   :  { %436 = vsyncpa [#allocation4], 1 }

// kernel: tpu_custom_call.1
= control target key start
LH: loop header
LB: loop body
LE: loop exit
PB: predicated region body
PF: predicated region fallthrough
CT: control target
= control target key end

     0   :  { %12 = vsyncpa [#allocation3], 0  ;;  %s863_s0 = inlined_call_operand.hbm [shape: bf16[8,128], index: 0, kind: input, shape index: {}]   ;;  %s864_s1 = inlined_call_operand.hbm [shape: bf16[128,128], index: 1, kind: input, shape index: {}]   ;;  %s865_s2 = inlined_call_operand.vmem [shape: f32[1,128], index: 2, kind: input, shape index: {}]   ;;  %s866_s3 = inlined_call_operand.hbm [shape: bf16[128,128], index: 3, kind: input, shape index: {}]   ;;  %s867_s4 = inlined_call_operand.vmem [shape: f32[1,128], index: 4, kind: input, shape index: {}]   ;;  %s868_s5 = inlined_call_operand.hbm [shape: bf16[128,128], index: 5, kind: input, shape index: {}]   ;;  %s869_s6 = inlined_call_operand.vmem [shape: f32[1,128], index: 6, kind: input, shape index: {}]   ;;  %s870_s7 = inlined_call_operand.hbm [shape: f32[8,128], index: 7, kind: output, shape index: {}]  }
   0x1   :  { %13 = vsyncpa [#allocation6], 0 }
   0x2   :  { %14 = vsyncpa [#allocation9], 0 }
   0x3   :  { %15 = vsyncpa [#allocation4], 0  ;;  %s706_s24 = smov [#allocation5]   ;;  %s588_s28 = scalar_lea.hbm %s864_s1, 1024 }
   0x4   :  { %s31_s25 = sshll.u32 %s706_s24, 4  ;;  %p589_p0 = scmp.ne.s32.totalorder %s864_s1, %s588_s28  ;;  %s32_s25 = int_to_ptr.vmem [resolvable:$true] %s31_s25 }
   0x5   :  { %p592_p1 = scmp.lt.u32.totalorder %s588_s28, %s864_s1 }
   0x7   :  { %p594_p2 = pnand %p592_p1, %p589_p0 }
   0x9   :  { %597 = shalt.err (!%p594_p2)
}
   0xa   :  { %s598_s10 = scalar_lea.vmem %s32_s25, 1024  ;;  %p603_p4 = scmp.lt.s32.totalorder %s32_s25, %s32_s25 }
   0xb   :  { %p599_p3 = scmp.ne.s32.totalorder %s32_s25, %s598_s10  ;;  %p604_p5 = scmp.lt.s32.totalorder %s598_s10, %s598_s10 }
   0xd   :  { %p605_p6 = por %p604_p5, %p603_p4 }
   0xf   :  { %p606_p7 = pnand %p605_p6, %p599_p3 }
  0x11   :  { %609 = shalt.err (!%p606_p7)
}
  0x12   :  { %s707_s11 = smov 64   ;;  %s708_s12 = smov 4  }
  0x13   :  { %37 = dma.hbm_to_vmem [thread:$0]  %s864_s1, 1024, %s32_s25, [#allocation6], %s707_s11, %s707_s11, %s708_s12  }
  0x14   :  { %s709_s15 = smov [#allocation2]   ;;  %s710_s17 = smov [#allocation7]  }
  0x15   :  { %s22_s16 = sshll.u32 %s709_s15, 4  ;;  %s45_s18 = sshll.u32 %s710_s17, 4  ;;  %s23_s16 = int_to_ptr.vmem [resolvable:$true] %s22_s16  ;;  %s46_s18 = int_to_ptr.vmem [resolvable:$true] %s45_s18 }
  0x16   :  { %s610_s21 = scalar_lea.hbm %s863_s0, 64 }
  0x17   :  { %p611_p8 = scmp.ne.s32.totalorder %s863_s0, %s610_s21  ;;  %p614_p9 = scmp.lt.u32.totalorder %s610_s21, %s863_s0 }
  0x19   :  { %p616_p10 = pnand %p614_p9, %p611_p8 }
  0x1b   :  { %619 = shalt.err (!%p616_p10)
}
  0x1c   :  { %s620_s1 = scalar_lea.vmem %s23_s16, 64  ;;  %p625_p12 = scmp.lt.s32.totalorder %s23_s16, %s23_s16 }
  0x1d   :  { %p621_p11 = scmp.ne.s32.totalorder %s23_s16, %s620_s1  ;;  %p626_p13 = scmp.lt.s32.totalorder %s620_s1, %s620_s1 }
  0x1f   :  { %p627_p0 = por %p626_p13, %p625_p12 }
  0x21   :  { %p628_p1 = pnand %p627_p0, %p621_p11 }
  0x23   :  { %631 = shalt.err (!%p628_p1)
}
  0x24   :  { %25 = dma.hbm_to_vmem [thread:$0]  %s863_s0, 64, %s23_s16, [#allocation3]  }
  0x25   :  { %s632_s30 = scalar_lea.hbm %s866_s3, 1024 }
  0x26   :  { %p633_p2 = scmp.ne.s32.totalorder %s866_s3, %s632_s30  ;;  %p636_p3 = scmp.lt.u32.totalorder %s632_s30, %s866_s3 }
  0x28   :  { %p638_p4 = pnand %p636_p3, %p633_p2 }
  0x2a   :  { %641 = shalt.err (!%p638_p4)
}
  0x2b   :  { %s642_s14 = scalar_lea.vmem %s46_s18, 1024  ;;  %p647_p6 = scmp.lt.s32.totalorder %s46_s18, %s46_s18 }
  0x2c   :  { %p643_p5 = scmp.ne.s32.totalorder %s46_s18, %s642_s14  ;;  %p648_p7 = scmp.lt.s32.totalorder %s642_s14, %s642_s14 }
  0x2e   :  { %p649_p8 = por %p648_p7, %p647_p6 }
  0x30   :  { %p650_p9 = pnand %p649_p8, %p643_p5 }
  0x32   :  { %653 = shalt.err (!%p650_p9)
}
  0x33   :  { %51 = dma.hbm_to_vmem [thread:$0]  %s866_s3, 1024, %s46_s18, [#allocation6], %s707_s11, %s707_s11, %s708_s12  }
  0x34   :  { %s711_s16 = smov [#allocation8]   ;;  %s654_s21 = scalar_lea.hbm %s868_s5, 1024 }
  0x35   :  { %s59_s17 = sshll.u32 %s711_s16, 4  ;;  %p655_p10 = scmp.ne.s32.totalorder %s868_s5, %s654_s21  ;;  %s60_s17 = int_to_ptr.vmem [resolvable:$true] %s59_s17 }
  0x36   :  { %p658_p11 = scmp.lt.u32.totalorder %s654_s21, %s868_s5 }
  0x38   :  { %p660_p12 = pnand %p658_p11, %p655_p10 }
  0x3a   :  { %663 = shalt.err (!%p660_p12)
}
  0x3b   :  { %s664_s1 = scalar_lea.vmem %s60_s17, 1024  ;;  %p669_p0 = scmp.lt.s32.totalorder %s60_s17, %s60_s17 }
  0x3c   :  { %p665_p13 = scmp.ne.s32.totalorder %s60_s17, %s664_s1  ;;  %p670_p1 = scmp.lt.s32.totalorder %s664_s1, %s664_s1 }
  0x3e   :  { %p671_p2 = por %p670_p1, %p669_p0 }
  0x40   :  { %p672_p3 = pnand %p671_p2, %p665_p13 }
  0x42   :  { %675 = shalt.err (!%p672_p3)
}
  0x43   :  { %65 = dma.hbm_to_vmem [thread:$0]  %s868_s5, 1024, %s60_s17, [#allocation9], %s707_s11, %s707_s11, %s708_s12  }
  0x44   :  { %698 = dma.done.wait [#allocation3], 64  }
  0x45   :  { %699 = vsyncadd [#allocation3], 4294967232 }
  0x46   :  { %700 = dma.done.wait [#allocation6], 2048  }
  0x47   :  { %701 = vsyncadd [#allocation6], 4294965248 }
  0x48   :  { %702 = dma.done.wait [#allocation9], 1024  }
  0x49   :  { %703 = vsyncadd [#allocation9], 4294966272  ;;  %v712_v0 = vmov 0.0   ;;  %vm713_vm0 = vmmov 0   ;;  %v560_v1 = vld [vmem:[#allocation5] sm:$0xff]   ;;  %v561_v2 = vld [vmem:[#allocation5 + $0x8] sm:$0xff]  }
  0x4a   :  { %491 = vmatprep.subr.bf16.mxu0 %v712_v0  ;;  %507 = vmatprep.mubr.msk.bf16.mxu0 %vm713_vm0, %v712_v0  ;;  %v562_v3 = vld [vmem:[#allocation5 + $0x10] sm:$0xff]   ;;  %v568_v4 = vld [vmem:[#allocation7] sm:$0xff]   ;;  %v563_v5 = vld [vmem:[#allocation5 + $0x18] sm:$0xff]  }
  0x4b   :  { %511 = vmatprep.subr.bf16.mxu1 %v712_v0  ;;  %527 = vmatprep.mubr.msk.bf16.mxu1 %vm713_vm0, %v712_v0  ;;  %v569_v6 = vld [vmem:[#allocation7 + $0x8] sm:$0xff]   ;;  %v564_v7 = vld [vmem:[#allocation5 + $0x20] sm:$0xff]   ;;  %v570_v8 = vld [vmem:[#allocation7 + $0x10] sm:$0xff]  }
  0x4c   :  { %492 = vmatpush3.bf16.msra.mxu0 %v560_v1  ;;  %512 = vmatpush3.bf16.msra.mxu1 %v568_v4  ;;  %v565_v9 = vld [vmem:[#allocation5 + $0x28] sm:$0xff]   ;;  %v571_v10 = vld [vmem:[#allocation7 + $0x18] sm:$0xff]   ;;  %v566_v11 = vld [vmem:[#allocation5 + $0x30] sm:$0xff]  }
  0x4d   :  { %493 = vmatprep.subr.bf16.mxu0 %v712_v0  ;;  %513 = vmatprep.subr.bf16.mxu1 %v712_v0  ;;  %v572_v12 = vld [vmem:[#allocation7 + $0x20] sm:$0xff]   ;;  %v567_v13 = vld [vmem:[#allocation5 + $0x38] sm:$0xff]   ;;  %v573_v14 = vld [vmem:[#allocation7 + $0x28] sm:$0xff]  }
  0x4e   :  { %v81_v15 = vld [vmem:[#allocation2] sm:$0xf]  ;;  %v574_v16 = vld [vmem:[#allocation7 + $0x30] sm:$0xff]   ;;  %v576_v18 = vld [vmem:[#allocation8] sm:$0xff]  }
  0x4f   :  { %v575_v17 = vld [vmem:[#allocation7 + $0x38] sm:$0xff]   ;;  %v577_v19 = vld [vmem:[#allocation8 + $0x8] sm:$0xff]   ;;  %v578_v20 = vld [vmem:[#allocation8 + $0x10] sm:$0xff]  }
  0x50   :  { %494 = vmatpush3.bf16.msra.mxu0 %v561_v2  ;;  %514 = vmatpush3.bf16.msra.mxu1 %v569_v6  ;;  %v579_v21 = vld [vmem:[#allocation8 + $0x18] sm:$0xff]   ;;  %v580_v29 = vld [vmem:[#allocation8 + $0x20] sm:$0xff]   ;;  %v581_v30 = vld [vmem:[#allocation8 + $0x28] sm:$0xff]  }
  0x51   :  { %495 = vmatprep.subr.bf16.mxu0 %v712_v0  ;;  %515 = vmatprep.subr.bf16.mxu1 %v712_v0  ;;  %v437_v22 = vld [vmem:[%s865_s2] ss:$0 sm:$0xff]  ;;  %v582_v31 = vld [vmem:[#allocation8 + $0x30] sm:$0xff]  }
  0x52   :  { %v583_v32 = vld [vmem:[#allocation8 + $0x38] sm:$0xff]  }
  0x53   :  { %v446_v33 = vld [vmem:[%s867_s4] ss:$0 sm:$0xff]  ;;  %s714_s4 = smov [#allocation10]  }
  0x54   :  { %496 = vmatpush3.bf16.msra.mxu0 %v562_v3  ;;  %516 = vmatpush3.bf16.msra.mxu1 %v570_v8  ;;  %v455_v41 = vld [vmem:[%s869_s6] ss:$0 sm:$0xff]  ;;  %s426_s28 = sshll.u32 %s714_s4, 4  ;;  %s427_s28 = int_to_ptr.vmem [resolvable:$true] %s426_s28 }
  0x55   :  { %497 = vmatprep.subr.bf16.mxu0 %v712_v0  ;;  %517 = vmatprep.subr.bf16.mxu1 %v712_v0  ;;  %s676_s29 = scalar_lea.vmem %s427_s28, 128  ;;  %p681_p5 = scmp.lt.s32.totalorder %s427_s28, %s427_s28 }
  0x56   :  { %p677_p4 = scmp.ne.s32.totalorder %s427_s28, %s676_s29  ;;  %p682_p6 = scmp.lt.s32.totalorder %s676_s29, %s676_s29 }
  0x58   :  { %498 = vmatpush3.bf16.msra.mxu0 %v563_v5  ;;  %518 = vmatpush3.bf16.msra.mxu1 %v571_v10  ;;  %p683_p7 = por %p682_p6, %p681_p5 }
  0x59   :  { %499 = vmatprep.subr.bf16.mxu0 %v712_v0  ;;  %519 = vmatprep.subr.bf16.mxu1 %v712_v0 }
  0x5a   :  { %p684_p8 = pnand %p683_p7, %p677_p4 }
  0x5c   :  { %500 = vmatpush3.bf16.msra.mxu0 %v564_v7  ;;  %520 = vmatpush3.bf16.msra.mxu1 %v572_v12 }
  0x5d   :  { %501 = vmatprep.subr.bf16.mxu0 %v712_v0  ;;  %521 = vmatprep.subr.bf16.mxu1 %v712_v0 }
  0x60   :  { %502 = vmatpush3.bf16.msra.mxu0 %v565_v9  ;;  %522 = vmatpush3.bf16.msra.mxu1 %v573_v14 }
  0x61   :  { %503 = vmatprep.subr.bf16.mxu0 %v712_v0  ;;  %523 = vmatprep.subr.bf16.mxu1 %v712_v0 }
  0x64   :  { %504 = vmatpush3.bf16.msra.mxu0 %v566_v11  ;;  %524 = vmatpush3.bf16.msra.mxu1 %v574_v16 }
  0x65   :  { %505 = vmatprep.subr.bf16.mxu0 %v712_v0  ;;  %525 = vmatprep.subr.bf16.mxu1 %v712_v0 }
  0x68   :  { %506 = vmatpush3.bf16.msra.mxu0 %v567_v13  ;;  %526 = vmatpush3.bf16.msra.mxu1 %v575_v17 }
  0x69   :  { %531 = vmatprep.subr.bf16.mxu0 %v712_v0 }
  0x6b   :  { %508 = vmatmul.mubr.bf16.vlgmr.msra.gmra.mrb[0].mxu0 %v81_v15 }
  0x6c   :  { %547 = vmatprep.mubr.msk.bf16.mxu0 %vm713_vm0, %v712_v0  ;;  %532 = vmatpush3.bf16.msra.mxu0 %v576_v18 }
  0x6d   :  { %533 = vmatprep.subr.bf16.mxu0 %v712_v0 }
  0x70   :  { %534 = vmatpush3.bf16.msra.mxu0 %v577_v19 }
  0x71   :  { %535 = vmatprep.subr.bf16.mxu0 %v712_v0 }
  0x74   :  { %536 = vmatpush3.bf16.msra.mxu0 %v578_v20 }
  0x75   :  { %537 = vmatprep.subr.bf16.mxu0 %v712_v0 }
  0x78   :  { %538 = vmatpush3.bf16.msra.mxu0 %v579_v21 }
  0x79   :  { %539 = vmatprep.subr.bf16.mxu0 %v712_v0 }
  0x7c   :  { %540 = vmatpush3.bf16.msra.mxu0 %v580_v29 }
  0x7d   :  { %541 = vmatprep.subr.bf16.mxu0 %v712_v0 }
  0x80   :  { %542 = vmatpush3.bf16.msra.mxu0 %v581_v30 }
  0x81   :  { %543 = vmatprep.subr.bf16.mxu0 %v712_v0 }
  0x84   :  { %544 = vmatpush3.bf16.msra.mxu0 %v582_v31 }
  0x85   :  { %545 = vmatprep.subr.bf16.mxu0 %v712_v0 }
  0x88   :  { %546 = vmatpush3.bf16.msra.mxu0 %v583_v32 }
 0x13e   :  { %v187_v23 = vpop.f32.mrb[0].mxu0 }
 0x13f   :  { %v188_v24 = vadd.f32 %v437_v22, %v187_v23  ;;  %v509_v25 = vpop.f32.mrb[1].mxu0 }
 0x140   :  { %v190_v26 = vpop.f32.mrb[2].mxu0 }
 0x141   :  { %v193_v27 = vpack.c.bf16 %v188_v24, %v188_v24  ;;  %v510_v28 = vpop.f32.mrb[3].mxu0 }
 0x143   :  { %528 = vmatmul.mubr.bf16.vlgmr.msra.gmra.mrb[0].mxu1 %v193_v27 }
 0x216   :  { %v299_v34 = vpop.f32.mrb[0].mxu1 }
 0x217   :  { %v300_v35 = vadd.f32 %v446_v33, %v299_v34  ;;  %v529_v36 = vpop.f32.mrb[1].mxu1 }
 0x218   :  { %v302_v37 = vpop.f32.mrb[2].mxu1 }
 0x219   :  { %584 = vtanh.f32 %v300_v35  ;;  %v530_v38 = vpop.f32.mrb[3].mxu1 }
 0x223   :  { %v585_v39 = vpop.eup %584 }
 0x224   :  { %v306_v40 = vpack.c.bf16 %v585_v39, %v585_v39 }
 0x226   :  { %548 = vmatmul.mubr.bf16.vlgmr.msra.gmra.mrb[4].mxu0 %v306_v40 }
 0x2f9   :  { %v412_v42 = vpop.f32.mrb[4].mxu0 }
 0x2fa   :  { %v413_v43 = vadd.f32 %v455_v41, %v412_v42  ;;  %v549_v44 = vpop.f32.mrb[5].mxu0 }
 0x2fb   :  { %v415_v45 = vpop.f32.mrb[6].mxu0 }
 0x2fc   :  { %586 = vtanh.f32 %v413_v43  ;;  %v550_v46 = vpop.f32.mrb[7].mxu0 }
 0x306   :  { %v587_v47 = vpop.eup %586 }
 0x307   :  { %419 = vst [vmem:[#allocation10] sm:$0xff] %v587_v47 }
 0x308   :  { %687 = shalt.err (!%p684_p8)
}
 0x309   :  { %s688_s8 = scalar_lea.hbm %s870_s7, 128 }
 0x30a   :  { %p689_p9 = scmp.ne.s32.totalorder %s870_s7, %s688_s8  ;;  %p692_p10 = scmp.lt.u32.totalorder %s688_s8, %s870_s7 }
 0x30c   :  { %p694_p11 = pnand %p692_p10, %p689_p9 }
 0x30e   :  { %697 = shalt.err (!%p694_p11)
}
 0x30f   :  { %429 = dma.vmem_to_hbm [thread:$0]  %s427_s28, 128, %s870_s7, [#allocation4]  }
 0x310   :  { %704 = dma.done.wait [#allocation4], 128  }
 0x311   :  { %705 = vsyncadd [#allocation4], 4294967168 }
 0x312   :  { %433 = vsyncpa [#allocation3], 1 }
 0x313   :  { %434 = vsyncpa [#allocation6], 1 }
 0x314   :  { %435 = vsyncpa [#allocation9], 1 }
 0x315   :  { %436 = vsyncpa [#allocation4], 1 }

</bundles_post_ra>
